<compile_context>
chip_gen: v7x
topology: tpu7x:2x2x1
jax: 0.10.0
libtpu: 0.0.40
codegen_flags: <defaults>
</compile_context>

<pallas_src>
import functools
from math import sqrt

import jax
import jax.numpy as jnp
from jax import lax
from jax.experimental import pallas as pl
from jax.experimental.pallas import tpu as pltpu


def _tpu_tuning():
    """Generation-dependent VMEM limit and tile sizes."""
    vmem_cap = 64 * 1024 * 1024
    try:
        info = pltpu.get_tpu_info()
        vmem_cap = int(getattr(info, "vmem_capacity_bytes", vmem_cap))
    except Exception:
        pass
    if vmem_cap >= 128 * 1024 * 1024:       # v5e / v6e: 128 MiB physical VMEM -> spend it
        return dict(vmem_limit=64 * 1024 * 1024, tm=1024, tl=256, ts=512)
    # v7x (64 MiB physical VMEM) or unknown: stay conservative.
    return dict(vmem_limit=32 * 1024 * 1024, tm=512, tl=256, ts=512)


_TUNE = _tpu_tuning()


# ----------------------------- Fused multi-output linear kernel -----------------------------
def _multi_linear_kernel(*refs, n_out):
    # refs = (x_ref, w_0..w_{n-1}, b_0..b_{n-1}, o_0..o_{n-1})
    x_ref = refs[0]
    w_refs = refs[1:1 + n_out]
    b_refs = refs[1 + n_out:1 + 2 * n_out]
    o_refs = refs[1 + 2 * n_out:]

    x = x_ref[...]
    for w_ref, b_ref, o_ref in zip(w_refs, b_refs, o_refs):
        w = w_ref[...]  # already stored in its MXU compute dtype -> no per-grid-step weight cast
        y = jnp.dot(x.astype(w.dtype), w, preferred_element_type=jnp.float32) + b_ref[...]
        o_ref[...] = y.astype(o_ref.dtype)


def pallas_multi_linear(x2d, weights, biases, *, out_dtype):
    """Applies several (w, b) projections to the SAME 2-D input in one pallas_call.

    x2d: (M, K); weights[i]: (K, N_i); biases[i]: (N_i,).  Returns tuple of (M, N_i) arrays.
    The x tile is DMA'd once per grid step and reused for every projection.
    """
    M, K = x2d.shape
    n_out = len(weights)
    tm_max = _TUNE["tm"]
    TM = M if M <= tm_max else tm_max
    grid = (pl.cdiv(M, TM),)

    biases2d = tuple(b.reshape(1, -1) for b in biases)

    # TODO(synk): mark the constant weight/bias BlockSpecs pipeline_mode=pl.Buffered(1)
    # (single-buffered) to reclaim VMEM once this path is load-bearing for very large d_model.
    in_specs = [pl.BlockSpec((TM, K), lambda i: (i, 0))]
    for w in weights:
        in_specs.append(pl.BlockSpec((K, w.shape[1]), lambda i: (0, 0)))
    for b in biases2d:
        in_specs.append(pl.BlockSpec((1, b.shape[1]), lambda i: (0, 0)))

    out_shapes = tuple(jax.ShapeDtypeStruct((M, w.shape[1]), out_dtype) for w in weights)
    out_specs = tuple(pl.BlockSpec((TM, w.shape[1]), lambda i: (i, 0)) for w in weights)

    kernel = functools.partial(_multi_linear_kernel, n_out=n_out)
    return pl.pallas_call(
        kernel,
        out_shape=out_shapes,
        grid=grid,
        in_specs=in_specs,
        out_specs=out_specs,
        compiler_params=pltpu.CompilerParams(
            dimension_semantics=("parallel",),
            vmem_limit_bytes=_TUNE["vmem_limit"],
        ),
    )(x2d, *weights, *biases2d)


# --------------------- Fused multi-head attention + output projection kernel ---------------------
def _mha_out_kernel(q_ref, k_ref, v_ref, wo_ref, bo_ref, o_ref,
                    m_scr, l_scr, acc_scr, *,
                    n_heads, d_keys, d_values, ts, s_total, needs_mask):
    s_idx = pl.program_id(2)

    @pl.when(s_idx == 0)
    def _init():
        m_scr[...] = jnp.full(m_scr.shape, -jnp.inf, m_scr.dtype)
        l_scr[...] = jnp.zeros(l_scr.shape, l_scr.dtype)
        acc_scr[...] = jnp.zeros(acc_scr.shape, acc_scr.dtype)

    q_all = q_ref[0]                     # (TL, H*E)  bf16 or f32 (scale already folded into wq)
    k_all = k_ref[0]                     # (TS, H*E)
    v_all = v_ref[0]                     # (TS, H*D)
    mxu_dtype = v_all.dtype

    if needs_mask:
        key_ok = (s_idx * ts + lax.broadcasted_iota(
            jnp.int32, (q_all.shape[0], ts), 1)) < s_total

    # Static loop over the small compile-time head count.  Per-head running state lives in VMEM
    # scratch refs, so each head's (TL, TS) score/prob temporaries die within its own iteration
    # (no trailing concatenate keeping H score matrices live -> far less vreg/spill pressure).
    # TODO(synk): a head-major (B, H, L, E) layout / batched dot_general would fill more of the
    # 256-wide MXU on v6e/v7x; the current E-deep per-head contraction under-fills it.
    for h in range(n_heads):
        q = q_all[:, h * d_keys:(h + 1) * d_keys]
        k = k_all[:, h * d_keys:(h + 1) * d_keys]
        v = v_all[:, h * d_values:(h + 1) * d_values]

        # scores: contract on E without an explicit transpose; f32 MXU accumulation.
        scores = lax.dot_general(q, k, (((1,), (1,)), ((), ())),
                                 preferred_element_type=jnp.float32)       # (TL, TS)
        if needs_mask:
            scores = jnp.where(key_ok, scores, -1e30)

        m_prev = m_scr[h]                                                   # (TL, 1)
        m_new = jnp.maximum(m_prev, jnp.max(scores, axis=-1, keepdims=True))
        alpha = jnp.exp(m_prev - m_new)
        p = jnp.exp(scores - m_new)
        l_scr[h] = alpha * l_scr[h] + jnp.sum(p, axis=-1, keepdims=True)
        acc_scr[h] = alpha * acc_scr[h] + jnp.dot(
            p.astype(mxu_dtype), v, preferred_element_type=jnp.float32)
        m_scr[h] = m_new

    # Finalize: per-head normalize + fused output projection -> one lane-dense (TL, d_model) store.
    @pl.when(s_idx == pl.num_programs(2) - 1)
    def _finalize():
        out = None
        for h in range(n_heads):
            inv = pl.reciprocal(l_scr[h], approx=True)                      # EUP slot, ~free
            o_h = (acc_scr[h] * inv).astype(wo_ref.dtype)                   # (TL, D)
            w_h = wo_ref[h * d_values:(h + 1) * d_values, :]                # (D, d_model) static
            c = jnp.dot(o_h, w_h, preferred_element_type=jnp.float32)
            out = c if out is None else out + c
        o_ref[0] = (out + bo_ref[...]).astype(o_ref.dtype)


def pallas_mha_out(q, k, v, wo, bo2d, *, n_heads, d_keys, d_values, out_dtype):
    # q: (B, L, H*E), k: (B, S, H*E), v: (B, S, H*D), wo: (H*D, d_model), bo2d: (1, d_model)
    # -> (B, L, d_model): softmax attention with the output projection fused in.
    B, L, HE = q.shape
    _, S, _ = k.shape
    HD = n_heads * d_values
    d_model_out = wo.shape[1]

    TL = L if L <= _TUNE["tl"] else _TUNE["tl"]
    TS = S if S <= _TUNE["ts"] else _TUNE["ts"]
    grid = (B, pl.cdiv(L, TL), pl.cdiv(S, TS))
    # TODO(synk): when B * ceil(L/TL) is tiny (v7x has 2 TensorCores), shrink TL or pack several
    # batches per grid step so both cores get work and the ~0.35us/step overhead is amortized.

    kernel = functools.partial(
        _mha_out_kernel,
        n_heads=n_heads, d_keys=d_keys, d_values=d_values,
        ts=TS, s_total=S, needs_mask=(S % TS != 0),
    )
    return pl.pallas_call(
        kernel,
        out_shape=jax.ShapeDtypeStruct((B, L, d_model_out), out_dtype),
        grid=grid,
        in_specs=[
            pl.BlockSpec((1, TL, HE), lambda b, li, si: (b, li, 0)),
            pl.BlockSpec((1, TS, HE), lambda b, li, si: (b, si, 0)),
            pl.BlockSpec((1, TS, HD), lambda b, li, si: (b, si, 0)),
            pl.BlockSpec((HD, d_model_out), lambda b, li, si: (0, 0)),
            pl.BlockSpec((1, d_model_out), lambda b, li, si: (0, 0)),
        ],
        out_specs=pl.BlockSpec((1, TL, d_model_out), lambda b, li, si: (b, li, 0)),
        scratch_shapes=[
            pltpu.VMEM((n_heads, TL, 1), jnp.float32),          # running max  m
            pltpu.VMEM((n_heads, TL, 1), jnp.float32),          # running sum  l
            pltpu.VMEM((n_heads, TL, d_values), jnp.float32),   # running un-normalized P@V
        ],
        compiler_params=pltpu.CompilerParams(
            dimension_semantics=("parallel", "parallel", "arbitrary"),
            vmem_limit_bytes=_TUNE["vmem_limit"],
        ),
    )(q, k, v, wo, bo2d)


# ----------------------------- AttentionLayer (JAX wrapper) -----------------------------
class AttentionLayerPallas:
    def __init__(self, d_model, n_heads, d_keys=None, d_values=None, *, key,
                 scale=None, use_bf16=True):
        d_keys = d_keys or d_model // n_heads
        d_values = d_values or d_model // n_heads
        self.n_heads = n_heads
        self.d_keys = d_keys
        self.d_values = d_values
        self.use_bf16 = use_bf16
        self._wdtype = jnp.bfloat16 if use_bf16 else jnp.float32   # stored weight / MXU dtype
        self._adtype = jnp.bfloat16 if use_bf16 else jnp.float32   # q/k/v intermediate dtype

        ks = jax.random.split(key, 8)

        def init_linear(kw, kb, d_in, d_out):
            # PyTorch-style uniform(-1/sqrt(d_in), 1/sqrt(d_in))
            bound = 1.0 / sqrt(d_in)
            w = jax.random.uniform(kw, (d_in, d_out), jnp.float32, -bound, bound)
            b = jax.random.uniform(kb, (d_out,), jnp.float32, -bound, bound)
            return w, b

        wq, bq = init_linear(ks[0], ks[1], d_model, d_keys * n_heads)
        wk, bk = init_linear(ks[2], ks[3], d_model, d_keys * n_heads)
        wv, bv = init_linear(ks[4], ks[5], d_model, d_values * n_heads)
        wo, bo = init_linear(ks[6], ks[7], d_values * n_heads, d_model)

        # FullAttention default scale=None -> 1/sqrt(E); fold the static scale into the query
        # projection so no per-step score/q scaling is needed inside the kernels.
        sc = scale if scale is not None else 1.0 / sqrt(d_keys)
        wq, bq = wq * sc, bq * sc

        # Weights stored directly in their MXU compute dtype; biases stay f32 (f32 accumulate).
        self.wq = wq.astype(self._wdtype)
        self.wk = wk.astype(self._wdtype)
        self.wv = wv.astype(self._wdtype)
        self.wo = wo.astype(self._wdtype)
        self.bq, self.bk, self.bv, self.bo = bq, bk, bv, bo

    def __call__(self, queries, keys, values, attn_mask=None, tau=None, delta=None):
        if attn_mask is not None or tau is not None or delta is not None:
            # TODO(synk): masked (mask_flag=True) / ProbAttention-style tau/delta not implemented.
            raise NotImplementedError(
                "AttentionLayerPallas implements FullAttention(mask_flag=False) only; "
                "attn_mask / tau / delta must be None.")

        B, L, _ = queries.shape
        _, S, _ = keys.shape
        H, E, D = self.n_heads, self.d_keys, self.d_values

        # Fused projections: one pallas_call per distinct input activation.
        # NOTE: dispatch uses Python object identity; layer(x, x + 0, x) takes the general
        # (still correct, slightly slower) path.
        if queries is keys and keys is values:
            q2, k2, v2 = pallas_multi_linear(
                queries.reshape(B * L, -1),
                (self.wq, self.wk, self.wv), (self.bq, self.bk, self.bv),
                out_dtype=self._adtype)
        elif keys is values:
            (q2,) = pallas_multi_linear(
                queries.reshape(B * L, -1), (self.wq,), (self.bq,), out_dtype=self._adtype)
            k2, v2 = pallas_multi_linear(
                keys.reshape(B * S, -1),
                (self.wk, self.wv), (self.bk, self.bv), out_dtype=self._adtype)
        else:
            (q2,) = pallas_multi_linear(
                queries.reshape(B * L, -1), (self.wq,), (self.bq,), out_dtype=self._adtype)
            (k2,) = pallas_multi_linear(
                keys.reshape(B * S, -1), (self.wk,), (self.bk,), out_dtype=self._adtype)
            (v2,) = pallas_multi_linear(
                values.reshape(B * S, -1), (self.wv,), (self.bv,), out_dtype=self._adtype)

        # Head-interleaved (B, seq, H*E) layout end-to-end -> no transposes between kernels.
        q = q2.reshape(B, L, H * E)
        k = k2.reshape(B, S, H * E)
        v = v2.reshape(B, S, H * D)

        # Attention + fused output projection (no (B, L, H*D) HBM round trip).
        out = pallas_mha_out(
            q, k, v, self.wo, self.bo.reshape(1, -1),
            n_heads=H, d_keys=E, d_values=D, out_dtype=queries.dtype)
        return out, None


# ----------------------------- Pure-JAX reference for correctness -----------------------------
def _reference(layer, queries, keys, values):
    B, L, _ = queries.shape
    _, S, _ = keys.shape
    H, E, D = layer.n_heads, layer.d_keys, layer.d_values
    wq = layer.wq.astype(jnp.float32)
    wk = layer.wk.astype(jnp.float32)
    wv = layer.wv.astype(jnp.float32)
    wo = layer.wo.astype(jnp.float32)
    # 1/sqrt(E) is already folded into wq/bq, so no extra score scaling here.
    q = (queries.reshape(B * L, -1) @ wq + layer.bq).reshape(B, L, H, E)
    k = (keys.reshape(B * S, -1) @ wk + layer.bk).reshape(B, S, H, E)
    v = (values.reshape(B * S, -1) @ wv + layer.bv).reshape(B, S, H, D)
    scores = jnp.einsum("blhe,bshe->bhls", q, k)
    a = jax.nn.softmax(scores, axis=-1)
    o = jnp.einsum("bhls,bshd->blhd", a, v).reshape(B * L, H * D)
    return (o @ wo + layer.bo).reshape(B, L, -1)


if __name__ == "__main__":
    root = jax.random.PRNGKey(0)
    kx, kq, kk, kv, kp1, kp2 = jax.random.split(root, 6)

    B, L, S, d_model, n_heads = 2, 8, 8, 32, 4

    # 1) self-attention (fused QKV path), bf16 weights/activations -> loose tolerance vs f32 math.
    x = jax.random.normal(kx, (B, L, d_model), jnp.float32)
    layer_bf16 = AttentionLayerPallas(d_model, n_heads, key=kp1, use_bf16=True)
    out1, attn1 = layer_bf16(x, x, x)
    out1 = jax.block_until_ready(out1)
    ref1 = _reference(layer_bf16, x, x, x)
    assert out1.shape == (B, L, d_model) and attn1 is None
    assert out1.dtype == jnp.float32
    assert jnp.allclose(out1, ref1, atol=5e-2, rtol=5e-2)

    # 2) cross-attention with shared K/V source (fused KV path), pure f32 -> tight tolerance.
    layer_f32 = AttentionLayerPallas(d_model, n_heads, key=kp2, use_bf16=False)
    q_in = jax.random.normal(kq, (B, L, d_model), jnp.float32)
    kv_in = jax.random.normal(kk, (B, S, d_model), jnp.float32)
    out2, _ = layer_f32(q_in, kv_in, kv_in)
    out2 = jax.block_until_ready(out2)
    ref2 = _reference(layer_f32, q_in, kv_in, kv_in)
    assert jnp.allclose(out2, ref2, atol=2e-3, rtol=2e-3)

    # 3) fully general path (distinct q/k/v inputs), pure f32 -> tight tolerance.
    v_in = jax.random.normal(kv, (B, S, d_model), jnp.float32)
    out3, _ = layer_f32(q_in, kv_in, v_in)
    out3 = jax.block_until_ready(out3)
    ref3 = _reference(layer_f32, q_in, kv_in, v_in)
    assert jnp.allclose(out3, ref3, atol=2e-3, rtol=2e-3)

    print("KERNEL_OK")
</pallas_src>

<mosaic_0001>
module attributes {stable_mosaic.version = 11 : i64} {
  func.func @_multi_linear_kernel(%arg0: i32, %arg1: memref<16x32xf32, #tpu.memory_space<vmem>>, %arg2: memref<32x32xbf16, #tpu.memory_space<vmem>>, %arg3: memref<32x32xbf16, #tpu.memory_space<vmem>>, %arg4: memref<32x32xbf16, #tpu.memory_space<vmem>>, %arg5: memref<1x32xf32, #tpu.memory_space<vmem>>, %arg6: memref<1x32xf32, #tpu.memory_space<vmem>>, %arg7: memref<1x32xf32, #tpu.memory_space<vmem>>, %arg8: memref<16x32xbf16, #tpu.memory_space<vmem>>, %arg9: memref<16x32xbf16, #tpu.memory_space<vmem>>, %arg10: memref<16x32xbf16, #tpu.memory_space<vmem>>) attributes {dimension_semantics = [#tpu.dimension_semantics<parallel>], iteration_bounds = array<i64: 1>, scalar_prefetch = 0 : i64, scratch_operands = 0 : i64, tpu.core_type = #tpu.core_type<tc>, window_params = [{transform_indices = @transform_0, window_bounds = array<i64: 16, 32>}, {pipeline_mode = #tpu.pipeline_mode<synchronous>, transform_indices = @transform_1, window_bounds = array<i64: 32, 32>}, {pipeline_mode = #tpu.pipeline_mode<synchronous>, transform_indices = @transform_2, window_bounds = array<i64: 32, 32>}, {pipeline_mode = #tpu.pipeline_mode<synchronous>, transform_indices = @transform_3, window_bounds = array<i64: 32, 32>}, {pipeline_mode = #tpu.pipeline_mode<synchronous>, transform_indices = @transform_4, window_bounds = array<i64: 1, 32>}, {pipeline_mode = #tpu.pipeline_mode<synchronous>, transform_indices = @transform_5, window_bounds = array<i64: 1, 32>}, {pipeline_mode = #tpu.pipeline_mode<synchronous>, transform_indices = @transform_6, window_bounds = array<i64: 1, 32>}, {transform_indices = @transform_7, window_bounds = array<i64: 16, 32>}, {transform_indices = @transform_8, window_bounds = array<i64: 16, 32>}, {transform_indices = @transform_9, window_bounds = array<i64: 16, 32>}]} {
    %c0 = arith.constant 0 : index
    %c0_0 = arith.constant 0 : index
    %0 = vector.load %arg1[%c0, %c0_0] : memref<16x32xf32, #tpu.memory_space<vmem>>, vector<16x32xf32>
    %c0_1 = arith.constant 0 : index
    %c0_2 = arith.constant 0 : index
    %1 = vector.load %arg2[%c0_1, %c0_2] : memref<32x32xbf16, #tpu.memory_space<vmem>>, vector<32x32xbf16>
    %2 = arith.truncf %0 : vector<16x32xf32> to vector<16x32xbf16>
    %cst = arith.constant dense<0.000000e+00> : vector<16x32xf32>
    %3 = tpu.matmul %2, %1, %cst {dimension_numbers = #tpu.dot_dimension_numbers<[1], [0], [0], [1], [0, 0, 1, 1], [], []>} : vector<16x32xbf16>, vector<32x32xbf16>, vector<16x32xf32> -> vector<16x32xf32>
    %c0_3 = arith.constant 0 : index
    %c0_4 = arith.constant 0 : index
    %4 = vector.load %arg5[%c0_3, %c0_4] : memref<1x32xf32, #tpu.memory_space<vmem>>, vector<1x32xf32>
    %5 = vector.broadcast %4 : vector<1x32xf32> to vector<16x32xf32>
    %6 = arith.addf %3, %5 : vector<16x32xf32>
    %7 = arith.truncf %6 : vector<16x32xf32> to vector<16x32xbf16>
    %c0_5 = arith.constant 0 : index
    %c0_6 = arith.constant 0 : index
    %8 = vector.load %arg8[%c0_5, %c0_6] : memref<16x32xbf16, #tpu.memory_space<vmem>>, vector<16x32xbf16>
    tpu.vector_store %arg8[%c0_5, %c0_6], %7 {strides = array<i32>} : memref<16x32xbf16, #tpu.memory_space<vmem>>, vector<16x32xbf16>,
    %c0_7 = arith.constant 0 : index
    %c0_8 = arith.constant 0 : index
    %9 = vector.load %arg3[%c0_7, %c0_8] : memref<32x32xbf16, #tpu.memory_space<vmem>>, vector<32x32xbf16>
    %10 = arith.truncf %0 : vector<16x32xf32> to vector<16x32xbf16>
    %cst_9 = arith.constant dense<0.000000e+00> : vector<16x32xf32>
    %11 = tpu.matmul %10, %9, %cst_9 {dimension_numbers = #tpu.dot_dimension_numbers<[1], [0], [0], [1], [0, 0, 1, 1], [], []>} : vector<16x32xbf16>, vector<32x32xbf16>, vector<16x32xf32> -> vector<16x32xf32>
    %c0_10 = arith.constant 0 : index
    %c0_11 = arith.constant 0 : index
    %12 = vector.load %arg6[%c0_10, %c0_11] : memref<1x32xf32, #tpu.memory_space<vmem>>, vector<1x32xf32>
    %13 = vector.broadcast %12 : vector<1x32xf32> to vector<16x32xf32>
    %14 = arith.addf %11, %13 : vector<16x32xf32>
    %15 = arith.truncf %14 : vector<16x32xf32> to vector<16x32xbf16>
    %c0_12 = arith.constant 0 : index
    %c0_13 = arith.constant 0 : index
    %16 = vector.load %arg9[%c0_12, %c0_13] : memref<16x32xbf16, #tpu.memory_space<vmem>>, vector<16x32xbf16>
    tpu.vector_store %arg9[%c0_12, %c0_13], %15 {strides = array<i32>} : memref<16x32xbf16, #tpu.memory_space<vmem>>, vector<16x32xbf16>,
    %c0_14 = arith.constant 0 : index
    %c0_15 = arith.constant 0 : index
    %17 = vector.load %arg4[%c0_14, %c0_15] : memref<32x32xbf16, #tpu.memory_space<vmem>>, vector<32x32xbf16>
    %18 = arith.truncf %0 : vector<16x32xf32> to vector<16x32xbf16>
    %cst_16 = arith.constant dense<0.000000e+00> : vector<16x32xf32>
    %19 = tpu.matmul %18, %17, %cst_16 {dimension_numbers = #tpu.dot_dimension_numbers<[1], [0], [0], [1], [0, 0, 1, 1], [], []>} : vector<16x32xbf16>, vector<32x32xbf16>, vector<16x32xf32> -> vector<16x32xf32>
    %c0_17 = arith.constant 0 : index
    %c0_18 = arith.constant 0 : index
    %20 = vector.load %arg7[%c0_17, %c0_18] : memref<1x32xf32, #tpu.memory_space<vmem>>, vector<1x32xf32>
    %21 = vector.broadcast %20 : vector<1x32xf32> to vector<16x32xf32>
    %22 = arith.addf %19, %21 : vector<16x32xf32>
    %23 = arith.truncf %22 : vector<16x32xf32> to vector<16x32xbf16>
    %c0_19 = arith.constant 0 : index
    %c0_20 = arith.constant 0 : index
    %24 = vector.load %arg10[%c0_19, %c0_20] : memref<16x32xbf16, #tpu.memory_space<vmem>>, vector<16x32xbf16>
    tpu.vector_store %arg10[%c0_19, %c0_20], %23 {strides = array<i32>} : memref<16x32xbf16, #tpu.memory_space<vmem>>, vector<16x32xbf16>,
    return
  }
  func.func @transform_0(%arg0: i32) -> (i32, i32) {
    %c0_i32 = arith.constant 0 : i32
    %c0_i32_0 = arith.constant 0 : i32
    return %arg0, %c0_i32 : i32, i32
  }
  func.func @transform_1(%arg0: i32) -> (i32, i32) {
    %c0_i32 = arith.constant 0 : i32
    %c0_i32_0 = arith.constant 0 : i32
    %c0_i32_1 = arith.constant 0 : i32
    return %c0_i32, %c0_i32_0 : i32, i32
  }
  func.func @transform_2(%arg0: i32) -> (i32, i32) {
    %c0_i32 = arith.constant 0 : i32
    %c0_i32_0 = arith.constant 0 : i32
    %c0_i32_1 = arith.constant 0 : i32
    return %c0_i32, %c0_i32_0 : i32, i32
  }
  func.func @transform_3(%arg0: i32) -> (i32, i32) {
    %c0_i32 = arith.constant 0 : i32
    %c0_i32_0 = arith.constant 0 : i32
    %c0_i32_1 = arith.constant 0 : i32
    return %c0_i32, %c0_i32_0 : i32, i32
  }
  func.func @transform_4(%arg0: i32) -> (i32, i32) {
    %c0_i32 = arith.constant 0 : i32
    %c0_i32_0 = arith.constant 0 : i32
    %c0_i32_1 = arith.constant 0 : i32
    return %c0_i32, %c0_i32_0 : i32, i32
  }
  func.func @transform_5(%arg0: i32) -> (i32, i32) {
    %c0_i32 = arith.constant 0 : i32
    %c0_i32_0 = arith.constant 0 : i32
    %c0_i32_1 = arith.constant 0 : i32
    return %c0_i32, %c0_i32_0 : i32, i32
  }
  func.func @transform_6(%arg0: i32) -> (i32, i32) {
    %c0_i32 = arith.constant 0 : i32
    %c0_i32_0 = arith.constant 0 : i32
    %c0_i32_1 = arith.constant 0 : i32
    return %c0_i32, %c0_i32_0 : i32, i32
  }
  func.func @transform_7(%arg0: i32) -> (i32, i32) {
    %c0_i32 = arith.constant 0 : i32
    %c0_i32_0 = arith.constant 0 : i32
    return %arg0, %c0_i32 : i32, i32
  }
  func.func @transform_8(%arg0: i32) -> (i32, i32) {
    %c0_i32 = arith.constant 0 : i32
    %c0_i32_0 = arith.constant 0 : i32
    return %arg0, %c0_i32 : i32, i32
  }
  func.func @transform_9(%arg0: i32) -> (i32, i32) {
    %c0_i32 = arith.constant 0 : i32
    %c0_i32_0 = arith.constant 0 : i32
    return %arg0, %c0_i32 : i32, i32
  }
}

</mosaic_0001>

<bundles_post_ra>
// kernel: tpu_custom_call.1
= control target key start
LH: loop header
LB: loop body
LE: loop exit
PB: predicated region body
PF: predicated region fallthrough
CT: control target
= control target key end

     0   :  { %15 = vsyncpa [#allocation3], 0  ;;  %s804_s0 = inlined_call_operand.hbm [shape: f32[16,32], index: 0, kind: input, shape index: {}]   ;;  %s805_s1 = inlined_call_operand.hbm [shape: bf16[32,32], index: 1, kind: input, shape index: {}]   ;;  %s806_s2 = inlined_call_operand.hbm [shape: bf16[32,32], index: 2, kind: input, shape index: {}]   ;;  %s807_s3 = inlined_call_operand.hbm [shape: bf16[32,32], index: 3, kind: input, shape index: {}]   ;;  %s808_s4 = inlined_call_operand.vmem [shape: f32[1,32], index: 4, kind: input, shape index: {}]   ;;  %s809_s5 = inlined_call_operand.vmem [shape: f32[1,32], index: 5, kind: input, shape index: {}]   ;;  %s810_s6 = inlined_call_operand.vmem [shape: f32[1,32], index: 6, kind: input, shape index: {}]   ;;  %s811_s7 = inlined_call_operand.hbm [shape: bf16[16,32], index: 7, kind: output, shape index: {0}]   ;;  %s812_s8 = inlined_call_operand.hbm [shape: bf16[16,32], index: 8, kind: output, shape index: {1}]   ;;  %s813_s9 = inlined_call_operand.hbm [shape: bf16[16,32], index: 9, kind: output, shape index: {2}]  }
   0x1   :  { %16 = vsyncpa [#allocation6], 0 }
   0x2   :  { %17 = vsyncpa [#allocation9], 0 }
   0x3   :  { %18 = vsyncpa [#allocation4], 0 }
   0x4   :  { %19 = vsyncpa [#allocation12], 0  ;;  %s607_s30 = smov [#allocation5]   ;;  %s443_s13 = scalar_lea.hbm %s805_s1, 256 }
   0x5   :  { %s37_s10 = sshll.u32 %s607_s30, 4  ;;  %p444_p0 = scmp.ne.s32.totalorder %s805_s1, %s443_s13  ;;  %s38_s10 = int_to_ptr.vmem [resolvable:$true] %s37_s10 }
   0x6   :  { %p447_p1 = scmp.lt.u32.totalorder %s443_s13, %s805_s1 }
   0x8   :  { %p449_p2 = pnand %p447_p1, %p444_p0 }
   0xa   :  { %452 = shalt.err (!%p449_p2)
}
   0xb   :  { %s453_s18 = scalar_lea.vmem %s38_s10, 256  ;;  %p458_p4 = scmp.lt.s32.totalorder %s38_s10, %s38_s10 }
   0xc   :  { %p454_p3 = scmp.ne.s32.totalorder %s38_s10, %s453_s18  ;;  %p459_p5 = scmp.lt.s32.totalorder %s453_s18, %s453_s18 }
   0xe   :  { %p460_p6 = por %p459_p5, %p458_p4 }
  0x10   :  { %p461_p7 = pnand %p460_p6, %p454_p3 }
  0x12   :  { %464 = shalt.err (!%p461_p7)
}
  0x13   :  { %s608_s19 = smov 64   ;;  %s609_s20 = smov 4  }
  0x14   :  { %43 = dma.hbm_to_vmem [thread:$0]  %s805_s1, 256, %s38_s10, [#allocation6], %s608_s19, %s608_s19, %s609_s20  }
  0x15   :  { %s610_s23 = smov [#allocation2]   ;;  %s465_s27 = scalar_lea.hbm %s804_s0, 256 }
  0x16   :  { %s25_s24 = sshll.u32 %s610_s23, 4  ;;  %p466_p8 = scmp.ne.s32.totalorder %s804_s0, %s465_s27  ;;  %s26_s24 = int_to_ptr.vmem [resolvable:$true] %s25_s24 }
  0x17   :  { %p469_p9 = scmp.lt.u32.totalorder %s465_s27, %s804_s0 }
  0x19   :  { %p471_p10 = pnand %p469_p9, %p466_p8 }
  0x1b   :  { %474 = shalt.err (!%p471_p10)
}
  0x1c   :  { %s475_s12 = scalar_lea.vmem %s26_s24, 256  ;;  %p480_p12 = scmp.lt.s32.totalorder %s26_s24, %s26_s24 }
  0x1d   :  { %p476_p11 = scmp.ne.s32.totalorder %s26_s24, %s475_s12  ;;  %p481_p13 = scmp.lt.s32.totalorder %s475_s12, %s475_s12 }
  0x1f   :  { %p482_p0 = por %p481_p13, %p480_p12 }
  0x21   :  { %p483_p1 = pnand %p482_p0, %p476_p11 }
  0x23   :  { %486 = shalt.err (!%p483_p1)
}
  0x24   :  { %s611_s1 = smov 128   ;;  %s612_s10 = smov 8  }
  0x25   :  { %31 = dma.hbm_to_vmem [thread:$0]  %s804_s0, 256, %s26_s24, [#allocation3], %s611_s1, %s611_s1, %s612_s10  }
  0x26   :  { %s613_s15 = smov [#allocation7]   ;;  %s614_s17 = smov [#allocation8]  }
  0x27   :  { %s49_s16 = sshll.u32 %s613_s15, 4  ;;  %s61_s18 = sshll.u32 %s614_s17, 4  ;;  %s50_s16 = int_to_ptr.vmem [resolvable:$true] %s49_s16  ;;  %s697_s18 = int_to_ptr.vmem [resolvable:$true] %s61_s18 }
  0x28   :  { %s487_s23 = scalar_lea.hbm %s806_s2, 256 }
  0x29   :  { %p488_p2 = scmp.ne.s32.totalorder %s806_s2, %s487_s23  ;;  %p491_p3 = scmp.lt.u32.totalorder %s487_s23, %s806_s2 }
  0x2b   :  { %p493_p4 = pnand %p491_p3, %p488_p2 }
  0x2d   :  { %496 = shalt.err (!%p493_p4)
}
  0x2e   :  { %s497_s0 = scalar_lea.vmem %s50_s16, 256  ;;  %p502_p6 = scmp.lt.s32.totalorder %s50_s16, %s50_s16 }
  0x2f   :  { %p498_p5 = scmp.ne.s32.totalorder %s50_s16, %s497_s0  ;;  %p503_p7 = scmp.lt.s32.totalorder %s497_s0, %s497_s0 }
  0x31   :  { %p504_p8 = por %p503_p7, %p502_p6 }
  0x33   :  { %p505_p9 = pnand %p504_p8, %p498_p5 }
  0x35   :  { %508 = shalt.err (!%p505_p9)
}
  0x36   :  { %55 = dma.hbm_to_vmem [thread:$0]  %s806_s2, 256, %s50_s16, [#allocation6], %s608_s19, %s608_s19, %s609_s20  }
  0x37   :  { %s509_s12 = scalar_lea.hbm %s807_s3, 256 }
  0x38   :  { %p510_p10 = scmp.ne.s32.totalorder %s807_s3, %s509_s12  ;;  %p513_p11 = scmp.lt.u32.totalorder %s509_s12, %s807_s3 }
  0x3a   :  { %p515_p12 = pnand %p513_p11, %p510_p10 }
  0x3c   :  { %518 = shalt.err (!%p515_p12)
}
  0x3d   :  { %s519_s15 = scalar_lea.vmem %s697_s18, 256  ;;  %p524_p0 = scmp.lt.s32.totalorder %s697_s18, %s697_s18 }
  0x3e   :  { %p520_p13 = scmp.ne.s32.totalorder %s697_s18, %s519_s15  ;;  %p525_p1 = scmp.lt.s32.totalorder %s519_s15, %s519_s15 }
  0x40   :  { %p526_p2 = por %p525_p1, %p524_p0 }
  0x42   :  { %p527_p3 = pnand %p526_p2, %p520_p13 }
  0x44   :  { %530 = shalt.err (!%p527_p3)
}
  0x45   :  { %67 = dma.hbm_to_vmem [thread:$0]  %s807_s3, 256, %s697_s18, [#allocation9], %s608_s19, %s608_s19, %s609_s20  }
  0x46   :  { %597 = dma.done.wait [#allocation3], 256  }
  0x47   :  { %598 = vsyncadd [#allocation3], 4294967040 }
  0x48   :  { %599 = dma.done.wait [#allocation6], 512  }
  0x49   :  { %600 = vsyncadd [#allocation6], 4294966784 }
  0x4a   :  { %601 = dma.done.wait [#allocation9], 256  }
  0x4b   :  { %602 = vsyncadd [#allocation9], 4294967040  ;;  %v615_v0 = vmov 0.0   ;;  %vm616_vm0 = vmmov 0   ;;  %v437_v1 = vld [vmem:[#allocation5] sm:$0xff]   ;;  %v438_v2 = vld [vmem:[#allocation5 + $0x8] sm:$0xff]  }
  0x4c   :  { %400 = vmatprep.subr.bf16.mxu0 %v615_v0  ;;  %408 = vmatprep.subr.bf16.mxu1 %v615_v0  ;;  %v439_v3 = vld [vmem:[#allocation7] sm:$0xff]   ;;  %v88_v5 = vld [vmem:[#allocation2 + $0x8] sm:$0xff]  ;;  %vm113_vm1 = vcmask 261120   ;;  %v440_v8 = vld [vmem:[#allocation8] sm:$0xff]   ;;  %vm166_vm2 = vcmask 257024   ;;  %s617_s22 = smov [#allocation10]  }
  0x4d   :  { %404 = vmatprep.mubr.msk.bf16.mxu0 %vm616_vm0, %v615_v0  ;;  %412 = vmatprep.mubr.msk.bf16.mxu1 %vm616_vm0, %v615_v0  ;;  %v87_v4 = vld [vmem:[#allocation2] sm:$0xff]  ;;  %v441_v7 = vld [vmem:[#allocation7 + $0x8] sm:$0xff]   ;;  %v442_v9 = vld [vmem:[#allocation8 + $0x8] sm:$0xff]   ;;  %s322_s23 = sshll.u32 %s617_s22, 4  ;;  %s618_s25 = smov [#allocation11]   ;;  %s323_s23 = int_to_ptr.vmem [resolvable:$true] %s322_s23 }
  0x4e   :  { %401 = vmatpush3.bf16.msra.mxu0 %v437_v1  ;;  %409 = vmatpush3.bf16.msra.mxu1 %v439_v3  ;;  %v93_v6 = vpack.c.bf16 %v88_v5, %v87_v4  ;;  %v367_v10 = vld [vmem:[%s808_s4] ss:$0 sm:$0xff]  ;;  %s334_s4 = sshll.u32 %s618_s25, 4  ;;  %s531_s27 = scalar_lea.vmem %s323_s23, 128  ;;  %s749_s4 = int_to_ptr.vmem [resolvable:$true] %s334_s4 }
  0x4f   :  { %402 = vmatprep.subr.bf16.mxu0 %v615_v0  ;;  %410 = vmatprep.subr.bf16.mxu1 %v615_v0  ;;  %v373_v12 = vld [vmem:[%s809_s5] ss:$0 sm:$0xff]  ;;  %p532_p4 = scmp.ne.s32.totalorder %s323_s23, %s531_s27  ;;  %p536_p5 = scmp.lt.s32.totalorder %s323_s23, %s323_s23 }
  0x50   :  { %v379_v27 = vld [vmem:[%s810_s6] ss:$0 sm:$0xff]  ;;  %p537_p6 = scmp.lt.s32.totalorder %s531_s27, %s531_s27 }
  0x52   :  { %403 = vmatpush3.bf16.msra.mxu0 %v438_v2  ;;  %411 = vmatpush3.bf16.msra.mxu1 %v441_v7  ;;  %p538_p7 = por %p537_p6, %p536_p5 }
  0x53   :  { %416 = vmatprep.subr.bf16.mxu0 %v615_v0 }
  0x54   :  { %p539_p8 = pnand %p538_p7, %p532_p4 }
  0x55   :  { %405 = vmatmul.mubr.msk.bf16.vlgmr.msra.gmra.mrb[0].mxu0 %vm113_vm1, %v93_v6  ;;  %413 = vmatmul.mubr.msk.bf16.vlgmr.msra.gmra.mrb[0].mxu1 %vm113_vm1, %v93_v6 }
  0x56   :  { %417 = vmatpush3.bf16.msra.mxu0 %v440_v8  ;;  %420 = vmatprep.mubr.msk.bf16.mxu0 %vm616_vm0, %v615_v0 }
  0x57   :  { %418 = vmatprep.subr.bf16.mxu0 %v615_v0 }
  0x5a   :  { %419 = vmatpush3.bf16.msra.mxu0 %v442_v9 }
  0x5d   :  { %421 = vmatmul.mubr.msk.bf16.vlgmr.msra.gmra.mrb[4].mxu0 %vm113_vm1, %v93_v6 }
 0x128   :  { %v151_v11 = vpop.f32.mrb[0].mxu0  ;;  %v226_v16 = vpop.f32.mrb[0].mxu1 }
 0x129   :  { %v152_v13 = vadd.f32 %v367_v10, %v151_v11  ;;  %v406_v14 = vpop.f32.mrb[1].mxu0  ;;  %v227_v20 = vadd.f32 %v373_v12, %v226_v16  ;;  %v414_v21 = vpop.f32.mrb[1].mxu1 }
 0x12a   :  { %v154_v15 = vpop.f32.mrb[2].mxu0  ;;  %v229_v22 = vpop.f32.mrb[2].mxu1 }
 0x12b   :  { %v385_v17 = vpack.c.bf16 %v152_v13, %v152_v13  ;;  %v155_v18 = vadd.f32 %v367_v10, %v154_v15  ;;  %v407_v19 = vpop.f32.mrb[3].mxu0  ;;  %v387_v24 = vpack.c.bf16 %v227_v20, %v227_v20  ;;  %v230_v25 = vadd.f32 %v373_v12, %v229_v22  ;;  %v415_v26 = vpop.f32.mrb[3].mxu1 }
 0x12d   :  { %v386_v23 = vpack.c.bf16 %v155_v18, %v155_v18  ;;  %167 = vst.msk [vmem:[#allocation10] sm:$0xf] %vm166_vm2, %v385_v17  ;;  %v388_v28 = vpack.c.bf16 %v230_v25, %v230_v25  ;;  %241 = vst.msk [vmem:[#allocation11] sm:$0xf] %vm166_vm2, %v387_v24 }
 0x12f   :  { %168 = vst.msk [vmem:[#allocation10 + $0x4] sm:$0xf] %vm166_vm2, %v386_v23 }
 0x130   :  { %v300_v29 = vpop.f32.mrb[4].mxu0 }
 0x131   :  { %542 = shalt.err (!%p539_p8)
}
 0x132   :  { %s543_s24 = scalar_lea.hbm %s811_s7, 128 }
 0x133   :  { %p544_p9 = scmp.ne.s32.totalorder %s811_s7, %s543_s24  ;;  %p547_p10 = scmp.lt.u32.totalorder %s543_s24, %s811_s7 }
 0x135   :  { %p549_p11 = pnand %p547_p10, %p544_p9 }
 0x137   :  { %552 = shalt.err (!%p549_p11)
}
 0x138   :  { %328 = dma.vmem_to_hbm [thread:$0]  %s323_s23, 128, %s811_s7, [#allocation4], %s608_s19, %s608_s19, %s609_s20   ;;  %v301_v30 = vadd.f32 %v379_v27, %v300_v29  ;;  %242 = vst.msk [vmem:[#allocation11 + $0x4] sm:$0xf] %vm166_vm2, %v388_v28  ;;  %v422_v31 = vpop.f32.mrb[5].mxu0 }
 0x139   :  { %s619_s10 = smov [#allocation13]   ;;  %v303_v32 = vpop.f32.mrb[6].mxu0  ;;  %s553_s14 = scalar_lea.vmem %s749_s4, 128 }
 0x13a   :  { %s346_s13 = sshll.u32 %s619_s10, 4  ;;  %p554_p12 = scmp.ne.s32.totalorder %s749_s4, %s553_s14  ;;  %s347_s13 = int_to_ptr.vmem [resolvable:$true] %s346_s13 }
 0x13b   :  { %p558_p13 = scmp.lt.s32.totalorder %s749_s4, %s749_s4  ;;  %p559_p0 = scmp.lt.s32.totalorder %s553_s14, %s553_s14 }
 0x13d   :  { %p560_p1 = por %p559_p0, %p558_p13 }
 0x13f   :  { %p561_p2 = pnand %p560_p1, %p554_p12 }
 0x141   :  { %564 = shalt.err (!%p561_p2)
}
 0x142   :  { %s565_s16 = scalar_lea.hbm %s812_s8, 128 }
 0x143   :  { %p566_p3 = scmp.ne.s32.totalorder %s812_s8, %s565_s16  ;;  %p569_p4 = scmp.lt.u32.totalorder %s565_s16, %s812_s8 }
 0x145   :  { %p571_p5 = pnand %p569_p4, %p566_p3 }
 0x147   :  { %574 = shalt.err (!%p571_p5)
}
 0x148   :  { %340 = dma.vmem_to_hbm [thread:$0]  %s749_s4, 128, %s812_s8, [#allocation12], %s608_s19, %s608_s19, %s609_s20   ;;  %v389_v33 = vpack.c.bf16 %v301_v30, %v301_v30  ;;  %v304_v34 = vadd.f32 %v379_v27, %v303_v32  ;;  %v423_v35 = vpop.f32.mrb[7].mxu0 }
 0x149   :  { %s575_s23 = scalar_lea.vmem %s347_s13, 128  ;;  %p580_p7 = scmp.lt.s32.totalorder %s347_s13, %s347_s13 }
 0x14a   :  { %315 = vst.msk [vmem:[#allocation13] sm:$0xf] %vm166_vm2, %v389_v33  ;;  %v390_v36 = vpack.c.bf16 %v304_v34, %v304_v34  ;;  %p576_p6 = scmp.ne.s32.totalorder %s347_s13, %s575_s23  ;;  %p581_p8 = scmp.lt.s32.totalorder %s575_s23, %s575_s23 }
 0x14c   :  { %316 = vst.msk [vmem:[#allocation13 + $0x4] sm:$0xf] %vm166_vm2, %v390_v36  ;;  %p582_p9 = por %p581_p8, %p580_p7 }
 0x14e   :  { %p583_p10 = pnand %p582_p9, %p576_p6 }
 0x150   :  { %586 = shalt.err (!%p583_p10)
}
 0x151   :  { %s587_s8 = scalar_lea.hbm %s813_s9, 128 }
 0x152   :  { %p588_p11 = scmp.ne.s32.totalorder %s813_s9, %s587_s8  ;;  %p591_p12 = scmp.lt.u32.totalorder %s587_s8, %s813_s9 }
 0x154   :  { %p593_p13 = pnand %p591_p12, %p588_p11 }
 0x156   :  { %596 = shalt.err (!%p593_p13)
}
 0x157   :  { %352 = dma.vmem_to_hbm [thread:$0]  %s347_s13, 128, %s813_s9, [#allocation12], %s608_s19, %s608_s19, %s609_s20  }
 0x158   :  { %603 = dma.done.wait [#allocation4], 128  }
 0x159   :  { %604 = vsyncadd [#allocation4], 4294967168 }
 0x15a   :  { %605 = dma.done.wait [#allocation12], 256  }
 0x15b   :  { %606 = vsyncadd [#allocation12], 4294967040 }
 0x15c   :  { %362 = vsyncpa [#allocation3], 1 }
 0x15d   :  { %363 = vsyncpa [#allocation6], 1 }
 0x15e   :  { %364 = vsyncpa [#allocation9], 1 }
 0x15f   :  { %365 = vsyncpa [#allocation4], 1 }
 0x160   :  { %366 = vsyncpa [#allocation12], 1 }

</bundles_post_ra>
